<compile_context>
chip_gen: v7x
topology: tpu7x:2x2x1
jax: 0.10.0
libtpu: 0.0.40
codegen_flags: <defaults>
</compile_context>

<pallas_src>
import functools

import jax
import jax.numpy as jnp
from jax.experimental import pallas as pl
from jax.experimental.pallas import tpu as pltpu

C_PAD = 128       # lane-padded channel width (in/hidden/out all <= 128 here)
MAX_TILE = 1024   # max tile edge; keeps double-buffered VMEM well under 16 MiB


def _round_up(x, m):
    return ((x + m - 1) // m) * m


def _choose_tiles(n):
    """Return (tm, tk, n_pad): n_pad multiple of 256, tm|n_pad, tk|n_pad."""
    n_pad = _round_up(max(n, 1), 256)

    def pick(cap):
        for t in (1024, 512, 256, 128):
            if t <= cap and n_pad % t == 0:
                return t
        return 128

    tk = pick(min(MAX_TILE, n_pad))          # big reduction tile (fewer steps)
    tm = pick(max(128, n_pad // 2))          # >= 2 row blocks for megacore/v7x
    return tm, tk, n_pad


# --------------------------------------------------------------------------
# Per-layer SAGE kernel:
#   out[i,:] = act( [ (A[i,:] @ h) * invdeg[i] ; h[i,:] ] @ [W_l; W_r] + b )
# A is int8 counts, h/W are bf16, accumulation and scaling are f32.
# --------------------------------------------------------------------------
def _sage_layer_kernel(a_ref, hk_ref, hroot_ref, invdeg_ref, w_ref, b_ref,
                       out_ref, acc_ref, *, apply_relu):
    k = pl.program_id(1)

    @pl.when(k == 0)
    def _():
        # Left half (lanes [:C_PAD]) = A@h accumulator; right half = root feats.
        acc_ref[:, :C_PAD] = jnp.zeros((acc_ref.shape[0], C_PAD), jnp.float32)
        acc_ref[:, C_PAD:] = hroot_ref[...].astype(jnp.float32)

    # Neighbor-sum partial: int8 counts upcast to bf16 (VPU, hidden under DMA),
    # bf16 x bf16 on the MXU with f32 accumulation.
    acc_ref[:, :C_PAD] += jnp.dot(a_ref[...].astype(jnp.bfloat16), hk_ref[...],
                                  preferred_element_type=jnp.float32)

    @pl.when(k == pl.num_programs(1) - 1)
    def _():
        # Mean normalization: per-row f32 inv-degree (exact), only on the agg half.
        acc_ref[:, :C_PAD] = acc_ref[:, :C_PAD] * invdeg_ref[...]
        # Fused projection: single K=2*C_PAD bf16 dot, no concat temporary.
        y = jnp.dot(acc_ref[...].astype(jnp.bfloat16), w_ref[...],
                    preferred_element_type=jnp.float32)
        y = y + b_ref[...]
        if apply_relu:
            y = jnp.maximum(y, 0.0)
        out_ref[...] = y.astype(out_ref.dtype)


def _sage_layer(a_i8, h_bf16, inv_deg, w_cat, b, *, apply_relu, tm, tk):
    n_pad, c_pad = h_bf16.shape
    grid = (n_pad // tm, n_pad // tk)
    kernel = functools.partial(_sage_layer_kernel, apply_relu=apply_relu)
    return pl.pallas_call(
        kernel,
        out_shape=jax.ShapeDtypeStruct((n_pad, c_pad), jnp.bfloat16),
        grid_spec=pltpu.PrefetchScalarGridSpec(
            num_scalar_prefetch=0,
            grid=grid,
            in_specs=[
                pl.BlockSpec((tm, tk), lambda i, k: (i, k)),            # A (int8)
                pl.BlockSpec((tk, c_pad), lambda i, k: (k, 0)),         # h (agg src)
                pl.BlockSpec((tm, c_pad), lambda i, k: (i, 0)),         # h (root rows)
                pl.BlockSpec((tm, 1), lambda i, k: (i, 0)),             # inv-degree
                pl.BlockSpec((2 * c_pad, c_pad), lambda i, k: (0, 0)),  # fused W (bf16)
                pl.BlockSpec((1, c_pad), lambda i, k: (0, 0)),          # bias (f32)
            ],
            out_specs=pl.BlockSpec((tm, c_pad), lambda i, k: (i, 0)),
            scratch_shapes=[pltpu.VMEM((tm, 2 * c_pad), jnp.float32)],
        ),
        compiler_params=pltpu.CompilerParams(
            dimension_semantics=("parallel", "arbitrary")),
    )(a_i8, h_bf16, h_bf16, inv_deg, w_cat, b)


# --------------------------------------------------------------------------
# Global mean-pool kernel:  out = P @ h   (P row-normalized per graph, bf16)
# --------------------------------------------------------------------------
def _pool_kernel(p_ref, h_ref, out_ref, acc_ref):
    k = pl.program_id(0)

    @pl.when(k == 0)
    def _():
        acc_ref[...] = jnp.zeros_like(acc_ref)

    acc_ref[...] += jnp.dot(p_ref[...], h_ref[...],
                            preferred_element_type=jnp.float32)

    @pl.when(k == pl.num_programs(0) - 1)
    def _():
        out_ref[...] = acc_ref[...]


def _global_mean_pool(p_bf16, h_bf16, *, tk):
    g_pad, n_pad = p_bf16.shape
    c_pad = h_bf16.shape[1]
    return pl.pallas_call(
        _pool_kernel,
        out_shape=jax.ShapeDtypeStruct((g_pad, c_pad), jnp.float32),
        grid_spec=pltpu.PrefetchScalarGridSpec(
            num_scalar_prefetch=0,
            grid=(n_pad // tk,),
            in_specs=[
                pl.BlockSpec((g_pad, tk), lambda k: (0, k)),
                pl.BlockSpec((tk, c_pad), lambda k: (k, 0)),
            ],
            out_specs=pl.BlockSpec((g_pad, c_pad), lambda k: (0, 0)),
            scratch_shapes=[pltpu.VMEM((g_pad, c_pad), jnp.float32)],
        ),
        compiler_params=pltpu.CompilerParams(
            dimension_semantics=("arbitrary",)),
    )(p_bf16, h_bf16)


# --------------------------------------------------------------------------
# Wrapper: builds padded int8 adjacency counts, f32 inv-degree, bf16 pooling
# matrix and packed bf16 weights, then runs 4 SAGE layers + pool.
# --------------------------------------------------------------------------
def graphsage_forward(x, edge_index, batch, params, num_graphs):
    """params: list of 4 tuples (W_l [Cin,Cout], W_r [Cin,Cout], b [1,Cout])."""
    n, c_in = x.shape
    out_channels = params[-1][0].shape[1]
    tm, tk, n_pad = _choose_tiles(n)
    g_pad = _round_up(num_graphs, 8)

    src, dst = edge_index[0], edge_index[1]

    # Adjacency as int8 edge counts (padded rows/cols stay zero) + f32 inv-degree.
    adj = jnp.zeros((n_pad, n_pad), jnp.int8).at[dst, src].add(
        jnp.ones_like(dst, dtype=jnp.int8))
    deg = jnp.sum(adj, axis=1, keepdims=True, dtype=jnp.float32)
    inv_deg = 1.0 / jnp.maximum(deg, 1.0)                      # [n_pad, 1] f32

    # Global mean-pool matrix, padded to [g_pad, n_pad], stored bf16.
    onehot = (batch[None, :] == jnp.arange(num_graphs)[:, None]).astype(jnp.float32)
    counts = onehot.sum(axis=1, keepdims=True)
    p_small = onehot / jnp.maximum(counts, 1.0)
    p_mat = jnp.zeros((g_pad, n_pad), jnp.float32).at[:num_graphs, :n].set(p_small)
    p_mat = p_mat.astype(jnp.bfloat16)

    # Lane-pad node features; carried in bf16 between layers.
    h = jnp.zeros((n_pad, C_PAD), jnp.bfloat16).at[:n, :c_in].set(
        x.astype(jnp.bfloat16))

    # Pack / pad weights: fused W = [W_l ; W_r] -> bf16 [2*C_PAD, C_PAD]; bias f32.
    packed = []
    for (wl, wr, b) in params:
        cin, cout = wl.shape
        wl_p = jnp.zeros((C_PAD, C_PAD), jnp.float32).at[:cin, :cout].set(wl)
        wr_p = jnp.zeros((C_PAD, C_PAD), jnp.float32).at[:cin, :cout].set(wr)
        w_cat = jnp.concatenate([wl_p, wr_p], axis=0).astype(jnp.bfloat16)
        b_p = jnp.zeros((1, C_PAD), jnp.float32).at[:, :cout].set(b)
        packed.append((w_cat, b_p))

    # 4 SAGE layers (ReLU between layers; dropout is identity in eval mode).
    for li, (w_cat, b_p) in enumerate(packed):
        h = _sage_layer(adj, h, inv_deg, w_cat, b_p,
                        apply_relu=(li < len(packed) - 1), tm=tm, tk=tk)

    pooled = _global_mean_pool(p_mat, h, tk=tk)
    return pooled[:num_graphs, :out_channels]


# --------------------------------------------------------------------------
# Reference (pure JAX, f32) for a correctness check.
# --------------------------------------------------------------------------
def _reference(x, edge_index, batch, params, num_graphs):
    n = x.shape[0]
    src, dst = edge_index[0], edge_index[1]
    adj = jnp.zeros((n, n), jnp.float32).at[dst, src].add(1.0)
    a = adj / jnp.maximum(adj.sum(axis=1, keepdims=True), 1.0)
    h = x.astype(jnp.float32)
    for li, (wl, wr, b) in enumerate(params):
        h = (a @ h) @ wl + h @ wr + b
        if li < len(params) - 1:
            h = jnp.maximum(h, 0.0)
    onehot = (batch[None, :] == jnp.arange(num_graphs)[:, None]).astype(jnp.float32)
    p = onehot / jnp.maximum(onehot.sum(axis=1, keepdims=True), 1.0)
    return p @ h


def _init_params(key, in_channels, hidden_channels, out_channels):
    dims = [(in_channels, hidden_channels),
            (hidden_channels, hidden_channels),
            (hidden_channels, hidden_channels),
            (hidden_channels, out_channels)]
    params = []
    for (cin, cout) in dims:
        key, k1, k2, k3 = jax.random.split(key, 4)
        scale = (6.0 / (cin + cout)) ** 0.5  # glorot-uniform
        wl = jax.random.uniform(k1, (cin, cout), jnp.float32, -scale, scale)
        wr = jax.random.uniform(k2, (cin, cout), jnp.float32, -scale, scale)
        b = jax.random.uniform(k3, (1, cout), jnp.float32, -0.1, 0.1)
        params.append((wl, wr, b))
    return params


if __name__ == "__main__":
    key = jax.random.PRNGKey(0)

    # Small synthetic batch: 2 graphs of 8 nodes each (16 nodes total).
    in_channels, hidden_channels, out_channels = 8, 32, 16
    num_nodes, num_graphs = 16, 2

    key, kx = jax.random.split(key)
    x = jax.random.normal(kx, (num_nodes, in_channels), jnp.float32)

    # Bidirectional ring within each graph + one chord per graph.
    edges = []
    for g in range(num_graphs):
        base = g * 8
        for i in range(8):
            a, b = base + i, base + (i + 1) % 8
            edges.append((a, b))
            edges.append((b, a))
        edges.append((base, base + 4))
        edges.append((base + 4, base))
    edge_index = jnp.array(edges, dtype=jnp.int32).T  # [2, E], row0=src, row1=dst

    batch = jnp.array([0] * 8 + [1] * 8, dtype=jnp.int32)

    params = _init_params(key, in_channels, hidden_channels, out_channels)

    out = graphsage_forward(x, edge_index, batch, params, num_graphs)
    out = jax.block_until_ready(out)

    assert out.shape == (num_graphs, out_channels)
    assert jnp.all(jnp.isfinite(out))

    # Tolerance accounts for bf16 feature / weight storage (f32 accumulation,
    # exact f32 mean normalization) over 4 stacked layers.
    ref = _reference(x, edge_index, batch, params, num_graphs)
    max_err = float(jnp.max(jnp.abs(out - ref)))
    assert max_err < 1e-1, f"mismatch vs reference: max_err={max_err}"

    print("KERNEL_OK")
</pallas_src>

<mosaic_0001>
module attributes {stable_mosaic.version = 11 : i64} {
  func.func @_sage_layer_kernel(%arg0: i32, %arg1: i32, %arg2: memref<128x256xi8, #tpu.memory_space<vmem>>, %arg3: memref<256x128xbf16, #tpu.memory_space<vmem>>, %arg4: memref<128x128xbf16, #tpu.memory_space<vmem>>, %arg5: memref<128x1xf32, #tpu.memory_space<vmem>>, %arg6: memref<256x128xbf16, #tpu.memory_space<vmem>>, %arg7: memref<1x128xf32, #tpu.memory_space<vmem>>, %arg8: memref<128x128xbf16, #tpu.memory_space<vmem>>, %arg9: memref<128x256xf32, #tpu.memory_space<vmem>>) attributes {dimension_semantics = [#tpu.dimension_semantics<parallel>, #tpu.dimension_semantics<arbitrary>], iteration_bounds = array<i64: 2, 1>, scalar_prefetch = 0 : i64, scratch_operands = 1 : i64, tpu.core_type = #tpu.core_type<tc>, window_params = [{transform_indices = @transform_0, window_bounds = array<i64: 128, 256>}, {transform_indices = @transform_1, window_bounds = array<i64: 256, 128>}, {transform_indices = @transform_2, window_bounds = array<i64: 128, 128>}, {transform_indices = @transform_3, window_bounds = array<i64: 128, 1>}, {pipeline_mode = #tpu.pipeline_mode<synchronous>, transform_indices = @transform_4, window_bounds = array<i64: 256, 128>}, {pipeline_mode = #tpu.pipeline_mode<synchronous>, transform_indices = @transform_5, window_bounds = array<i64: 1, 128>}, {transform_indices = @transform_6, window_bounds = array<i64: 128, 128>}]} {
    %c0_i32 = arith.constant 0 : i32
    %0 = arith.cmpi eq, %arg1, %c0_i32 : i32
    %1 = arith.extui %0 : i1 to i32
    %c0_i32_0 = arith.constant 0 : i32
    %2 = arith.cmpi ne, %1, %c0_i32_0 : i32
    scf.if %2 {
      %cst_10 = arith.constant 0.000000e+00 : f32
      %13 = vector.broadcast %cst_10 : f32 to vector<128x128xf32>
      %c0_11 = arith.constant 0 : index
      %c0_12 = arith.constant 0 : index
      %14 = vector.load %arg9[%c0_11, %c0_12] : memref<128x256xf32, #tpu.memory_space<vmem>>, vector<128x128xf32>
      tpu.vector_store %arg9[%c0_11, %c0_12], %13 {strides = array<i32>} : memref<128x256xf32, #tpu.memory_space<vmem>>, vector<128x128xf32>,
      %c0_13 = arith.constant 0 : index
      %c0_14 = arith.constant 0 : index
      %15 = vector.load %arg4[%c0_13, %c0_14] : memref<128x128xbf16, #tpu.memory_space<vmem>>, vector<128x128xbf16>
      %16 = arith.extf %15 : vector<128x128xbf16> to vector<128x128xf32>
      %c0_15 = arith.constant 0 : index
      %c128 = arith.constant 128 : index
      %17 = vector.load %arg9[%c0_15, %c128] : memref<128x256xf32, #tpu.memory_space<vmem>>, vector<128x128xf32>
      tpu.vector_store %arg9[%c0_15, %c128], %16 {strides = array<i32>} : memref<128x256xf32, #tpu.memory_space<vmem>>, vector<128x128xf32>,
    } else {
    }
    %c0 = arith.constant 0 : index
    %c0_1 = arith.constant 0 : index
    %3 = vector.load %arg9[%c0, %c0_1] : memref<128x256xf32, #tpu.memory_space<vmem>>, vector<128x128xf32>
    %c0_2 = arith.constant 0 : index
    %c0_3 = arith.constant 0 : index
    %4 = vector.load %arg2[%c0_2, %c0_3] : memref<128x256xi8, #tpu.memory_space<vmem>>, vector<128x256xi8>
    %5 = arith.sitofp %4 : vector<128x256xi8> to vector<128x256xbf16>
    %c0_4 = arith.constant 0 : index
    %c0_5 = arith.constant 0 : index
    %6 = vector.load %arg3[%c0_4, %c0_5] : memref<256x128xbf16, #tpu.memory_space<vmem>>, vector<256x128xbf16>
    %cst = arith.constant dense<0.000000e+00> : vector<128x128xf32>
    %7 = tpu.matmul %5, %6, %cst {dimension_numbers = #tpu.dot_dimension_numbers<[1], [0], [0], [1], [0, 0, 1, 1], [], []>} : vector<128x256xbf16>, vector<256x128xbf16>, vector<128x128xf32> -> vector<128x128xf32>
    %8 = arith.addf %3, %7 : vector<128x128xf32>
    %c0_6 = arith.constant 0 : index
    %c0_7 = arith.constant 0 : index
    %9 = vector.load %arg9[%c0_6, %c0_7] : memref<128x256xf32, #tpu.memory_space<vmem>>, vector<128x128xf32>
    tpu.vector_store %arg9[%c0_6, %c0_7], %8 {strides = array<i32>} : memref<128x256xf32, #tpu.memory_space<vmem>>, vector<128x128xf32>,
    %c0_i32_8 = arith.constant 0 : i32
    %10 = arith.cmpi eq, %arg1, %c0_i32_8 : i32
    %11 = arith.extui %10 : i1 to i32
    %c0_i32_9 = arith.constant 0 : i32
    %12 = arith.cmpi ne, %11, %c0_i32_9 : i32
    scf.if %12 {
      %c0_10 = arith.constant 0 : index
      %c0_11 = arith.constant 0 : index
      %13 = vector.load %arg9[%c0_10, %c0_11] : memref<128x256xf32, #tpu.memory_space<vmem>>, vector<128x128xf32>
      %c0_12 = arith.constant 0 : index
      %c0_13 = arith.constant 0 : index
      %14 = vector.load %arg5[%c0_12, %c0_13] : memref<128x1xf32, #tpu.memory_space<vmem>>, vector<128x1xf32>
      %15 = vector.broadcast %14 : vector<128x1xf32> to vector<128x128xf32>
      %16 = arith.mulf %13, %15 : vector<128x128xf32>
      %c0_14 = arith.constant 0 : index
      %c0_15 = arith.constant 0 : index
      %17 = vector.load %arg9[%c0_14, %c0_15] : memref<128x256xf32, #tpu.memory_space<vmem>>, vector<128x128xf32>
      tpu.vector_store %arg9[%c0_14, %c0_15], %16 {strides = array<i32>} : memref<128x256xf32, #tpu.memory_space<vmem>>, vector<128x128xf32>,
      %c0_16 = arith.constant 0 : index
      %c0_17 = arith.constant 0 : index
      %18 = vector.load %arg9[%c0_16, %c0_17] : memref<128x256xf32, #tpu.memory_space<vmem>>, vector<128x256xf32>
      %19 = arith.truncf %18 : vector<128x256xf32> to vector<128x256xbf16>
      %c0_18 = arith.constant 0 : index
      %c0_19 = arith.constant 0 : index
      %20 = vector.load %arg6[%c0_18, %c0_19] : memref<256x128xbf16, #tpu.memory_space<vmem>>, vector<256x128xbf16>
      %cst_20 = arith.constant dense<0.000000e+00> : vector<128x128xf32>
      %21 = tpu.matmul %19, %20, %cst_20 {dimension_numbers = #tpu.dot_dimension_numbers<[1], [0], [0], [1], [0, 0, 1, 1], [], []>} : vector<128x256xbf16>, vector<256x128xbf16>, vector<128x128xf32> -> vector<128x128xf32>
      %c0_21 = arith.constant 0 : index
      %c0_22 = arith.constant 0 : index
      %22 = vector.load %arg7[%c0_21, %c0_22] : memref<1x128xf32, #tpu.memory_space<vmem>>, vector<1x128xf32>
      %23 = vector.broadcast %22 : vector<1x128xf32> to vector<128x128xf32>
      %24 = arith.addf %21, %23 : vector<128x128xf32>
      %cst_23 = arith.constant 0.000000e+00 : f32
      %25 = vector.broadcast %cst_23 : f32 to vector<128x128xf32>
      %26 = arith.maximumf %24, %25 : vector<128x128xf32>
      %27 = arith.truncf %26 : vector<128x128xf32> to vector<128x128xbf16>
      %c0_24 = arith.constant 0 : index
      %c0_25 = arith.constant 0 : index
      %28 = vector.load %arg8[%c0_24, %c0_25] : memref<128x128xbf16, #tpu.memory_space<vmem>>, vector<128x128xbf16>
      tpu.vector_store %arg8[%c0_24, %c0_25], %27 {strides = array<i32>} : memref<128x128xbf16, #tpu.memory_space<vmem>>, vector<128x128xbf16>,
    } else {
    }
    return
  }
  func.func @transform_0(%arg0: i32, %arg1: i32) -> (i32, i32) {
    %c0_i32 = arith.constant 0 : i32
    return %arg0, %arg1 : i32, i32
  }
  func.func @transform_1(%arg0: i32, %arg1: i32) -> (i32, i32) {
    %c0_i32 = arith.constant 0 : i32
    %c0_i32_0 = arith.constant 0 : i32
    return %arg1, %c0_i32 : i32, i32
  }
  func.func @transform_2(%arg0: i32, %arg1: i32) -> (i32, i32) {
    %c0_i32 = arith.constant 0 : i32
    %c0_i32_0 = arith.constant 0 : i32
    return %arg0, %c0_i32 : i32, i32
  }
  func.func @transform_3(%arg0: i32, %arg1: i32) -> (i32, i32) {
    %c0_i32 = arith.constant 0 : i32
    %c0_i32_0 = arith.constant 0 : i32
    return %arg0, %c0_i32 : i32, i32
  }
  func.func @transform_4(%arg0: i32, %arg1: i32) -> (i32, i32) {
    %c0_i32 = arith.constant 0 : i32
    %c0_i32_0 = arith.constant 0 : i32
    %c0_i32_1 = arith.constant 0 : i32
    return %c0_i32, %c0_i32_0 : i32, i32
  }
  func.func @transform_5(%arg0: i32, %arg1: i32) -> (i32, i32) {
    %c0_i32 = arith.constant 0 : i32
    %c0_i32_0 = arith.constant 0 : i32
    %c0_i32_1 = arith.constant 0 : i32
    return %c0_i32, %c0_i32_0 : i32, i32
  }
  func.func @transform_6(%arg0: i32, %arg1: i32) -> (i32, i32) {
    %c0_i32 = arith.constant 0 : i32
    %c0_i32_0 = arith.constant 0 : i32
    return %arg0, %c0_i32 : i32, i32
  }
}

</mosaic_0001>

<bundles_post_ra>
// kernel: tpu_custom_call.1
= control target key start
LH: loop header
LB: loop body
LE: loop exit
PB: predicated region body
PF: predicated region fallthrough
CT: control target
= control target key end

     0   :  { %s2384_s0 = inlined_call_operand.vmem [shape: s8[256,256], index: 0, kind: input, shape index: {}]   ;;  %s2385_s1 = inlined_call_operand.vmem [shape: bf16[256,128], index: 1, kind: input, shape index: {}]   ;;  %s2386_s2 = inlined_call_operand.hbm [shape: bf16[256,128], index: 2, kind: input, shape index: {}]   ;;  %s2387_s3 = inlined_call_operand.vmem [shape: f32[256,1], index: 3, kind: input, shape index: {}]   ;;  %s2388_s4 = inlined_call_operand.hbm [shape: bf16[256,128], index: 4, kind: input, shape index: {}]   ;;  %s2389_s5 = inlined_call_operand.vmem [shape: f32[1,128], index: 5, kind: input, shape index: {}]   ;;  %s2390_s6 = inlined_call_operand.hbm [shape: bf16[256,128], index: 6, kind: output, shape index: {}]  }
   0x1   :  { %2398 = sst [smem:[#allocation12_spill]] %s2386_s2 }
   0x2   :  { %11 = vsyncpa [#allocation4], 0 }
   0x3   :  { %13 = vsyncpa [#allocation4 + $0x1], 0 }
   0x4   :  { %14 = vsyncpa [#allocation7], 0 }
   0x5   :  { %15 = vsyncpa [#allocation5], 0 }
   0x6   :  { %17 = vsyncpa [#allocation5 + $0x1], 0  ;;  %s2029_s21 = smov 0   ;;  %s2031_s22 = smov 0  }
   0x7   :  { %s2033_s23 = smov 0   ;;  %s2035_s24 = smov 0  }
   0x8   :  { %s2037_s25 = smov 0   ;;  %s2039_s26 = smov 0  }
   0x9 LB: > { %s1423_s27 = sadd.s32 4294967295, %s1984_s26   ;;  %s1424_s28 = sadd.s32 4294967294, %s1984_s26   ;;  %s1984_s26 = sphi %s2039_s26, %s23_s26   ;;  %s1980_s25 = sphi %s2037_s25, %s2422_s25   ;;  %s1976_s24 = sphi %s2035_s24, %s2421_s24   ;;  %s1972_s23 = sphi %s2033_s23, %s2420_s23   ;;  %s1968_s22 = sphi %s2031_s22, %s2419_s22   ;;  %s1964_s21 = sphi %s2029_s21, %s2418_s21  }
   0xa   : > { %p109_p0 = scmp.ne.s32.totalorder %s1968_s22, %s1964_s21  ;;  %p2063_p1 = scmp.eq.s32.totalorder %s1423_s27, 0 }
   0xb   : > { %p2067_p2 = scmp.eq.s32.totalorder %s1423_s27, 1  ;;  %p207_p3 = scmp.eq.s32.totalorder %s1424_s28, 1 }
   0xc   : > { %s2399_s29 = scalar_select %p2063_p1, 1, 0 }
   0xd   : > { %s2400_s30 = scalar_select %p2067_p2, 1, 0 }
   0xe   : > { %p2073_p4 = por %p2063_p1, %p109_p0  ;;  %p1425_p5 = scmp.ge.s32.totalorder %s1984_s26, 1 }
   0xf   : > { %p2078_p6 = por %p207_p3, %p109_p0  ;;  %p214_p7 = scmp.lt.s32.totalorder %s1984_s26, 3 }
  0x10   : > { %s2401_s7 = scalar_select %p2073_p4, 1, 0 }
  0x11   : > { %s2402_s8 = scalar_select %p2078_p6, 1, 0 }
  0x12   : > { %p2083_p8 = pnand %p1425_p5, %p214_p7  ;;  %s1986_s10 = smov [#allocation6]  }
  0x13   : > { %s235_s11 = sshll.u32 %s1986_s10, 4  ;;  %s35_s13 = sadd.s32 1, %s1980_s25  ;;  %s236_s11 = int_to_ptr.vmem [resolvable:$true] %s235_s11 }
  0x14   : > { %s2403_s9 = scalar_select %p2083_p8, 1, 0 }
  0x15   : > { %p1736_p9 = pneg %p2083_p8  ;;  %s1840_s16 = scalar_lea.hbm %s2388_s4, 2048 }
  0x16   : > { %p1841_p12 = scmp.ne.s32.totalorder %s2388_s4, %s1840_s16  ;;  %p1847_p5 = scmp.lt.u32.totalorder %s1840_s16, %s2388_s4 }
  0x17   : > { %p2092_p11 = pnand %p1736_p9, %p2063_p1 }
  0x19   : > { %p1842_p13 = pneg %p2092_p11 }
  0x1b   : > { %p1843_p0 = pnand %p1842_p13, %p1841_p12 }
  0x1d   : > { %p1844_p3 = pneg %p1843_p0 }
  0x1f   : > { %p1849_p7 = pnand %p1847_p5, %p1844_p3 }
  0x21   : > { %1852 = shalt.err (!%p1849_p7)
}
  0x22   : > { %s1853_s27 = scalar_lea.vmem %s236_s11, 2048  ;;  %p1861_p1 = scmp.lt.s32.totalorder %s236_s11, %s236_s11 }
  0x23   : > { %p1854_p9 = scmp.ne.s32.totalorder %s236_s11, %s1853_s27  ;;  %p1862_p4 = scmp.lt.s32.totalorder %s1853_s27, %s1853_s27 }
  0x25   : > { %p1856_p10 = pnand %p1854_p9, %p1842_p13  ;;  %p1863_p8 = por %p1862_p4, %p1861_p1 }
  0x27   : > { %p1857_p6 = pneg %p1856_p10 }
  0x29   : > { %p1864_p2 = pnand %p1863_p8, %p1857_p6 }
  0x2b   : > { %1867 = shalt.err (!%p1864_p2)
}
  0x2c   : > { %s2395_s28 = smov 64   ;;  %s2396_s10 = smov 4  }
  0x2d   : > { %1739 = dma.hbm_to_vmem [thread:$0]  (!%p2092_p11), %s2388_s4, 2048, %s236_s11, [#allocation7], %s2395_s28, %s2395_s28, %s2396_s10  }
  0x2e   : > { %p37_p1 = scmp.ge.s32.totalorder %s35_s13, 2  ;;  %s96_s16 = sadd.s32 1, %s1972_s23 }
  0x2f   : > { %p103_p2 = scmp.ne.s32.totalorder %s1972_s23, %s1968_s22  ;;  %p104_p4 = scmp.eq.s32.totalorder %s1984_s26, 0 }
  0x30   : > { %s2424_s13 = smov (%p37_p1, %s35_s13), 0  ;;  %p2406_p8 = scmp.ne.s32.totalorder %s2400_s30, 0 }
  0x31   : > { %p2122_p6 = por %p104_p4, %p103_p2  ;;  %s93_s18 = ssub.s32 %s1980_s25, %s2424_s13 }
  0x32   : > { %p2128_p10 = por %p2406_p8, %p103_p2  ;;  %p1749_p12 = scmp.lt.s32.totalorder %s1984_s26, 2 }
  0x33   : > { %p94_p11 = scmp.eq.s32.totalorder %s93_s18, 0  ;;  %s267_s11 = sand.u32 1, %s1972_s23  }
  0x34   : > { %s1429_s19 = sshll.u32 %s267_s11, 6  ;;  %s1495_s27 = sshll.u32 %s1980_s25, 10 }
  0x35   : > { %s2137_s20 = scalar_select %p94_p11, %s1972_s23, %s96_s16  }
  0x36   : > { %s2408_s2 = sld [smem:[#allocation12_spill]]  ;;  %s271_s30 = scalar_lea.vmem [#allocation3], %s1429_s19 }
  0x37   : > { %s278_s10 = sshll.u32 %s271_s30, 4  ;;  %p2149_p13 = pnand %p1749_p12, %p2122_p6  ;;  %s2145_s10 = int_to_ptr.vmem [resolvable:$true] %s278_s10 }
  0x38   : > { %s2153_s16 = scalar_lea.sflag [#allocation4], %s267_s11 }
  0x39   : > { %p1870_p3 = pneg %p2149_p13 }
  0x3c   : > { %s2143_s28 = scalar_lea.hbm %s2408_s2, %s1495_s27  ;;  %s1873_s17 = scalar_lea.hbm %s2408_s2, 2048 }
  0x3d   : > { %s1868_s14 = scalar_lea.hbm %s2143_s28, 1024  ;;  %p1874_p9 = scmp.lt.u32.totalorder %s2143_s28, %s2408_s2 }
  0x3e   : > { %p1869_p0 = scmp.ne.s32.totalorder %s2143_s28, %s1868_s14  ;;  %p1875_p1 = scmp.lt.u32.totalorder %s1873_s17, %s1868_s14 }
  0x3f   : > { %p1877_p4 = scmp.lt.u32.totalorder %s1868_s14, %s2143_s28 }
  0x40   : > { %p1871_p5 = pnand %p1870_p3, %p1869_p0  ;;  %p1876_p2 = por %p1875_p1, %p1874_p9 }
  0x42   : > { %p1872_p7 = pneg %p1871_p5  ;;  %p1878_p6 = por %p1877_p4, %p1876_p2 }
  0x44   : > { %p1879_p8 = pnand %p1878_p6, %p1872_p7 }
  0x46   : > { %1882 = shalt.err (!%p1879_p8)
}
  0x47   : > { %s1883_s11 = scalar_lea.vmem %s2145_s10, 1024  ;;  %s1989_s19 = smov [#allocation3]  }
  0x48   : > { %p1884_p12 = scmp.ne.s32.totalorder %s2145_s10, %s1883_s11  ;;  %s1888_s27 = sshll.u32 %s1989_s19, 4  ;;  %s1889_s27 = int_to_ptr.vmem [resolvable:$false] %s1888_s27 }
  0x49   : > { %s1890_s15 = scalar_lea.vmem %s1889_s27, 2048  ;;  %p1891_p5 = scmp.lt.s32.totalorder %s2145_s10, %s1889_s27 }
  0x4a   : > { %p1886_p11 = pnand %p1884_p12, %p1870_p3  ;;  %p1892_p9 = scmp.lt.s32.totalorder %s1890_s15, %s1883_s11 }
  0x4c   : > { %p1887_p0 = pneg %p1886_p11  ;;  %p1893_p1 = por %p1892_p9, %p1891_p5 }
  0x4e   : > { %p1894_p2 = pnand %p1893_p1, %p1887_p0 }
  0x50   : > { %1897 = shalt.err (!%p1894_p2)
}
  0x51   : > { %s2410_s14 = smov 4   ;;  %s2411_s17 = smov 64  }
  0x52   : > { %1743 = dma.hbm_to_vmem [thread:$0]  (!%p2149_p13), %s2143_s28, 1024, %s2145_s10, %s2153_s16, %s2411_s17, %s2411_s17, %s2410_s14  }
  0x53   : > { %p2412_p3 = scmp.ne.s32.totalorder %s2403_s9, 0 }
  0x54   : > { %s2187_s30 = sand.u32 (!%p2412_p3), 1, %s1968_s22   ;;  %p2413_p7 = scmp.ne.s32.totalorder (!%p2412_p3), %s2401_s7, 0 }
  0x55   : > { %299 = sbr.rel (%p2412_p3) target bundleno = 645 (0x285), region = 44  ;;  %s2397_s11 = sshll.u32 (!%p2412_p3), %s2187_s30, 6 }
  0x56   : > { %s302_s19 = scalar_lea.sflag (!%p2412_p3), [#allocation4], %s2187_s30  ;;  %s2193_s18 = scalar_lea.vmem (!%p2412_p3), [#allocation3], %s2397_s11 }
  0x5c   : > { %1951 = dma.done.wait (%p2413_p7), %s302_s19, 1024  }
  0x5d   : > { %1953 = vsyncadd (%p2413_p7), %s302_s19, 4294966272  ;;  %p2414_p13 = scmp.ne.s32.totalorder %s2399_s29, 0 }
  0x5f   : > { %1955 = dma.done.wait (%p2414_p13), [#allocation7], 2048  }
  0x60   : > { %1957 = vsyncadd (%p2414_p13), [#allocation7], 4294965248  ;;  %v1990_v0 = vmov 0   ;;  %s1436_s9 = sshll.u32 %s1976_s24, 2  ;;  %v1808_v1 = vld [vmem:[%s2385_s1 + $0x40] sm:$0xff]   ;;  %s1439_s7 = sshll.u32 %s1976_s24, 4 }
  0x61   : > { %1806 = vset.pattern.permute.xlu0 %v1990_v0  ;;  %1807 = vset.pattern.permute.xlu1 %v1990_v0  ;;  %v1809_v2 = vld [vmem:[%s2385_s1] sm:$0xff]   ;;  %v1810_v3 = vld [vmem:[%s2385_s1 + $0x48] sm:$0xff]   ;;  %p360_p4 = scmp.lt.s32.totalorder %s1436_s9, 7  ;;  %v1812_v5 = vld [vmem:[%s2385_s1 + $0x50] sm:$0xff]   ;;  %p378_p6 = scmp.lt.s32.totalorder %s1439_s7, 31 }
  0x62   : > { %1600 = vmatprep.subr.bf16.mxu0 %v1808_v1  ;;  %v1811_v4 = vld [vmem:[%s2385_s1 + $0x8] sm:$0xff]   ;;  %v1813_v6 = vld [vmem:[%s2385_s1 + $0x10] sm:$0xff]   ;;  %v1814_v7 = vld [vmem:[%s2385_s1 + $0x58] sm:$0xff]   ;;  %s1274_s27 = scalar_lea.sflag [#allocation5], %s2187_s30 }
  0x63   : > { %1601 = vmatpush3.bf16.msra.mxu0 %v1809_v2  ;;  %s2426_s9 = smov (!%p360_p4, %s1436_s9), 7  ;;  %s2428_s7 = smov (!%p378_p6, %s1439_s7), 31  ;;  %v1815_v8 = vld [vmem:[%s2385_s1 + $0x18] sm:$0xff]   ;;  %v1816_v9 = vld [vmem:[%s2385_s1 + $0x60] sm:$0xff]   ;;  %v1818_v11 = vld [vmem:[%s2385_s1 + $0x68] sm:$0xff]  }
  0x64   : > { %1602 = vmatprep.subr.bf16.mxu0 %v1810_v3  ;;  %s1496_s14 = sshll.u32 %s2426_s9, 4  ;;  %s1440_s11 = sshll.u32 %s2428_s7, 3  ;;  %v1817_v10 = vld [vmem:[%s2385_s1 + $0x20] sm:$0xff]   ;;  %v1819_v15 = vld [vmem:[%s2385_s1 + $0x28] sm:$0xff]   ;;  %v1820_v17 = vld [vmem:[%s2385_s1 + $0x70] sm:$0xff]  }
  0x65   : > { %s2235_s2 = scalar_lea.vmem %s2384_s0, %s1496_s14  ;;  %s2243_s17 = scalar_lea.vmem %s2387_s3, %s1440_s11  ;;  %v1821_v20 = vld [vmem:[%s2385_s1 + $0x30] sm:$0xff]   ;;  %v1822_v21 = vld [vmem:[%s2385_s1 + $0x78] sm:$0xff]   ;;  %v1824_v24 = vld [vmem:[#allocation6 + $0x40] sm:$0xff]  }
  0x66   : > { %v470_v12 = vld [vmem:[%s2235_s2 + $0x8] sm:$0xff]  ;;  %v769_v14 = vld [vmem:[%s2243_s17] sm:$0xff]  ;;  %v771_v16 = vld [vmem:[%s2243_s17 + $0x10] sm:$0xff]  ;;  %1664 = vmatprep.subr.bf16.mxu1 %v1824_v24  ;;  %s1513_s14 = sshll.u32 %s1976_s24, 10  ;;  %s1991_s24 = smov [#allocation8]  }
  0x67   : > { %1603 = vmatpush3.bf16.msra.mxu0 %v1811_v4  ;;  %v478_v13 = vunpack.c.l.s8.bf16 %v470_v12  ;;  %787 = vperm.xlu0 %1806, %v769_v14   ;;  %v770_v18 = vld [vmem:[%s2243_s17 + $0x8] sm:$0xff]  ;;  %v772_v19 = vld [vmem:[%s2243_s17 + $0x18] sm:$0xff]  ;;  %v773_v22 = vld [vmem:[%s2243_s17 + $0x20] sm:$0xff]  ;;  %v480_v33 = vunpack.c.h.s8.bf16 %v470_v12  ;;  %s2332_s16 = scalar_lea.hbm %s2390_s6, %s1513_s14  ;;  %s1902_s15 = sshll.u32 %s1991_s24, 4  ;;  %s1903_s15 = int_to_ptr.vmem [resolvable:$false] %s1902_s15 }
  0x68   : > { %1604 = vmatprep.subr.bf16.mxu0 %v1812_v5  ;;  %797 = vperm.xlu1 %1807, %v771_v16   ;;  %v774_v23 = vld [vmem:[%s2243_s17 + $0x28] sm:$0xff]  ;;  %v1823_v25 = vld [vmem:[%s2385_s1 + $0x38] sm:$0xff]   ;;  %v469_v26 = vld [vmem:[%s2235_s2] sm:$0xff]  ;;  %s1904_s29 = scalar_lea.vmem %s1903_s15, 2048 }
  0x69   : > { %653 = vmatprep.mubr.bf16.mxu0 %v478_v13  ;;  %v1825_v27 = vld [vmem:[#allocation6] sm:$0xff]   ;;  %v775_v28 = vld [vmem:[%s2243_s17 + $0x30] sm:$0xff]  ;;  %v1826_v29 = vld [vmem:[#allocation6 + $0x48] sm:$0xff]   ;;  %v477_v32 = vunpack.c.l.s8.bf16 %v469_v26  ;;  %v479_v42 = vunpack.c.h.s8.bf16 %v469_v26 }
  0x6a   : > { %1665 = vmatpush3.bf16.msra.mxu1 %v1825_v27  ;;  %v1827_v30 = vld [vmem:[#allocation6 + $0x8] sm:$0xff]   ;;  %v776_v31 = vld [vmem:[%s2243_s17 + $0x38] sm:$0xff]  ;;  %v777_v34 = vld [vmem:[%s2243_s17 + $0x40] sm:$0xff] }
  0x6b   : > { %1605 = vmatpush3.bf16.msra.mxu0 %v1813_v6  ;;  %792 = vperm.xlu0 %1806, %v770_v18   ;;  %v1828_v35 = vld [vmem:[#allocation6 + $0x50] sm:$0xff]   ;;  %v778_v37 = vld [vmem:[%s2243_s17 + $0x48] sm:$0xff]  ;;  %v472_v38 = vld [vmem:[%s2235_s2 + $0x18] sm:$0xff] }
  0x6c   : > { %1606 = vmatprep.subr.bf16.mxu0 %v1814_v7  ;;  %802 = vperm.xlu1 %1807, %v772_v19   ;;  %v1829_v36 = vld [vmem:[#allocation6 + $0x10] sm:$0xff]   ;;  %v1830_v39 = vld [vmem:[#allocation6 + $0x58] sm:$0xff]   ;;  %v482_v44 = vunpack.c.l.s8.bf16 %v472_v38  ;;  %v1832_v45 = vld [vmem:[#allocation6 + $0x60] sm:$0xff]   ;;  %v484_v55 = vunpack.c.h.s8.bf16 %v472_v38 }
  0x6d   : > { %1666 = vmatprep.subr.bf16.mxu1 %v1826_v29  ;;  %v1831_v40 = vld [vmem:[#allocation6 + $0x18] sm:$0xff]   ;;  %v779_v41 = vld [vmem:[%s2243_s17 + $0x50] sm:$0xff]  ;;  %v1833_v46 = vld [vmem:[#allocation6 + $0x20] sm:$0xff]  }
  0x6e   : > { %1667 = vmatpush3.bf16.msra.mxu1 %v1827_v30  ;;  %v780_v43 = vld [vmem:[%s2243_s17 + $0x58] sm:$0xff]  ;;  %v781_v47 = vld [vmem:[%s2243_s17 + $0x60] sm:$0xff]  ;;  %v782_v48 = vld [vmem:[%s2243_s17 + $0x68] sm:$0xff] }
  0x6f   : > { %1607 = vmatpush3.bf16.msra.mxu0 %v1815_v8  ;;  %807 = vperm.xlu0 %1806, %v773_v22   ;;  %v471_v49 = vld [vmem:[%s2235_s2 + $0x10] sm:$0xff]  ;;  %v1834_v50 = vld [vmem:[#allocation6 + $0x68] sm:$0xff]   ;;  %v784_v54 = vld [vmem:[%s2243_s17 + $0x78] sm:$0xff] }
  0x70   : > { %1608 = vmatprep.subr.bf16.mxu0 %v1816_v9  ;;  %812 = vperm.xlu1 %1807, %v774_v23   ;;  %v1835_v51 = vld [vmem:[#allocation6 + $0x28] sm:$0xff]   ;;  %v783_v52 = vld [vmem:[%s2243_s17 + $0x70] sm:$0xff]  ;;  %v481_v53 = vunpack.c.l.s8.bf16 %v471_v49  ;;  %v483_v57 = vunpack.c.h.s8.bf16 %v471_v49  ;;  %v473_v59 = vld [vmem:[%s2235_s2 + $0x20] sm:$0xff] }
  0x71   : > { %1668 = vmatprep.subr.bf16.mxu1 %v1828_v35  ;;  %v474_v56 = vld [vmem:[%s2235_s2 + $0x28] sm:$0xff]  ;;  %v485_v60 = vunpack.c.l.s8.bf16 %v473_v59  ;;  %v476_v62 = vld [vmem:[%s2235_s2 + $0x38] sm:$0xff]  ;;  %v487_v63 = vunpack.c.h.s8.bf16 %v473_v59  ;;  %v475_v1 = vld [vmem:[%s2235_s2 + $0x30] sm:$0xff] }
  0x72   : > { %1669 = vmatpush3.bf16.msra.mxu1 %v1829_v36  ;;  %v486_v58 = vunpack.c.l.s8.bf16 %v474_v56  ;;  %v488_v61 = vunpack.c.h.s8.bf16 %v474_v56  ;;  %v490_v0 = vunpack.c.l.s8.bf16 %v476_v62  ;;  %v489_v2 = vunpack.c.l.s8.bf16 %v475_v1  ;;  %v1836_v5 = vld [vmem:[#allocation6 + $0x70] sm:$0xff]   ;;  %v1838_v7 = vld [vmem:[#allocation6 + $0x78] sm:$0xff]   ;;  %v1515_v9 = vld [vmem:[%s2193_s18] sm:$0xff]  }
  0x73   : > { %1609 = vmatpush3.bf16.msra.mxu0 %v1817_v10  ;;  %817 = vperm.xlu0 %1806, %v775_v28   ;;  %v492_v3 = vunpack.c.h.s8.bf16 %v476_v62  ;;  %v491_v4 = vunpack.c.h.s8.bf16 %v475_v1  ;;  %v1837_v6 = vld [vmem:[#allocation6 + $0x30] sm:$0xff]   ;;  %v1839_v8 = vld [vmem:[#allocation6 + $0x38] sm:$0xff]   ;;  %v1586_v23 = vld [vmem:[%s2193_s18 + $0x8] sm:$0xff]  }
  0x74   : > { %1610 = vmatprep.subr.bf16.mxu0 %v1818_v11  ;;  %822 = vperm.xlu1 %1807, %v776_v31  }
  0x75   : > { %1670 = vmatprep.subr.bf16.mxu1 %v1830_v39  ;;  %1112 = vmatprep.mubr.bf16.mxu1 %v1515_v9 }
  0x76   : > { %1671 = vmatpush3.bf16.msra.mxu1 %v1831_v40 }
  0x77   : > { %1611 = vmatpush3.bf16.msra.mxu0 %v1819_v15  ;;  %827 = vperm.xlu0 %1806, %v777_v34   ;;  %v1587_v34 = vld [vmem:[%s2193_s18 + $0x10] sm:$0xff]  }
  0x78   : > { %1612 = vmatprep.subr.bf16.mxu0 %v1820_v17  ;;  %832 = vperm.xlu1 %1807, %v778_v37  }
  0x79   : > { %1672 = vmatprep.subr.bf16.mxu1 %v1832_v45 }
  0x7a   : > { %1673 = vmatpush3.bf16.msra.mxu1 %v1833_v46  ;;  %v1588_v46 = vld [vmem:[%s2193_s18 + $0x18] sm:$0xff]  }
  0x7b   : > { %1613 = vmatpush3.bf16.msra.mxu0 %v1821_v20  ;;  %837 = vperm.xlu0 %1806, %v779_v41  }
  0x7c   : > { %1614 = vmatprep.subr.bf16.mxu0 %v1822_v21  ;;  %842 = vperm.xlu1 %1807, %v780_v43  }
  0x7d   : > { %1674 = vmatprep.subr.bf16.mxu1 %v1834_v50 }
  0x7e   : > { %1675 = vmatpush3.bf16.msra.mxu1 %v1835_v51 }
  0x7f   : > { %1615 = vmatpush3.bf16.msra.mxu0 %v1823_v25  ;;  %847 = vperm.xlu0 %1806, %v781_v47  }
  0x80   : > { %852 = vperm.xlu1 %1807, %v782_v48   ;;  %1676 = vmatprep.subr.bf16.mxu1 %v1836_v5 }
  0x82   : > { %654 = vmatmul.mubr.bf16.vlgmr.msra.gmra.mrb[0].mxu0 %v477_v32  ;;  %1677 = vmatpush3.bf16.msra.mxu1 %v1837_v6  ;;  %v1590_v6 = vld [vmem:[%s2193_s18 + $0x28] sm:$0xff]  }
  0x83   : > { %661 = vmatprep.mubr.bf16.mxu0 %v480_v33  ;;  %857 = vperm.xlu0 %1806, %v783_v52  }
  0x84   : > { %862 = vperm.xlu1 %1807, %v784_v54   ;;  %1678 = vmatprep.subr.bf16.mxu1 %v1838_v7 }
  0x86   : > { %1679 = vmatpush3.bf16.msra.mxu1 %v1839_v8 }
  0x8a   : > { %662 = vmatmul.mubr.bf16.gmra.mrb[4].mxu0 %v479_v42 }
  0x8b   : > { %669 = vmatprep.mubr.bf16.mxu0 %v482_v44 }
  0x92   : > { %670 = vmatmul.mubr.bf16.gmra.mrb[8].mxu0 %v481_v53 }
  0x93   : > { %677 = vmatprep.mubr.bf16.mxu0 %v484_v55 }
  0x9a   : > { %678 = vmatmul.mubr.bf16.gmra.mrb[12].mxu0 %v483_v57 }
  0x9b   : > { %685 = vmatprep.mubr.bf16.mxu0 %v486_v58  ;;  %v1589_v58 = vld [vmem:[%s2193_s18 + $0x20] sm:$0xff]  }
  0xa2   : > { %686 = vmatmul.mubr.bf16.gmra.mrb[16].mxu0 %v485_v60 }
  0xa3   : > { %693 = vmatprep.mubr.bf16.mxu0 %v488_v61 }
  0xaa   : > { %694 = vmatmul.mubr.bf16.gmra.mrb[20].mxu0 %v487_v63 }
  0xab   : > { %701 = vmatprep.mubr.bf16.mxu0 %v490_v0 }
  0xb2   : > { %702 = vmatmul.mubr.bf16.gmra.mrb[24].mxu0 %v489_v2 }
  0xb3   : > { %709 = vmatprep.mubr.bf16.mxu0 %v492_v3 }
  0xba   : > { %710 = vmatmul.mubr.bf16.gmra.mrb[28].mxu0 %v491_v4 }
  0xe6   : > { %v788_v10 = vpop.permute.xlu0 %787 }
  0xe7   : > { %v798_v20 = vpop.permute.xlu1 %797 }
  0xea   : > { %v793_v17 = vpop.permute.xlu0 %792 }
  0xeb   : > { %v803_v29 = vpop.permute.xlu1 %802 }
  0xee   : > { %v808_v40 = vpop.permute.xlu0 %807 }
  0xef   : > { %v813_v41 = vpop.permute.xlu1 %812 }
  0xf2   : > { %v818_v52 = vpop.permute.xlu0 %817 }
  0xf3   : > { %v823_v53 = vpop.permute.xlu1 %822 }
  0xf6   : > { %v828_v0 = vpop.permute.xlu0 %827 }
  0xf7   : > { %v833_v1 = vpop.permute.xlu1 %832 }
 0x155   : > { %v1616_v11 = vpop.f32.mrb[0].mxu0 }
 0x156   : > { %v1617_v12 = vpop.f32.mrb[1].mxu0 }
 0x157   : > { %v1618_v13 = vadd.f32 %v1617_v12, %v1616_v11  ;;  %v1619_v14 = vpop.f32.mrb[2].mxu0  ;;  %v838_v12 = vpop.permute.xlu0 %837 }
 0x158   : > { %v1620_v15 = vpop.f32.mrb[3].mxu0 }
 0x159   : > { %v1621_v16 = vadd.f32 %v1620_v15, %v1619_v14  ;;  %v865_v18 = vmul.f32 %v1618_v13, %v788_v10  ;;  %v843_v13 = vpop.permute.xlu1 %842 }
 0x15b   : > { %v866_v19 = vmul.f32 %v1621_v16, %v793_v17 }
 0x15d   : > { %v1622_v21 = vpop.f32.mrb[4].mxu0  ;;  %v929_v22 = vpack.c.bf16 %v866_v19, %v865_v18  ;;  %v1591_v18 = vld [vmem:[%s2193_s18 + $0x30] sm:$0xff]  }
 0x15e   : > { %v1623_v24 = vpop.f32.mrb[5].mxu0 }
 0x15f   : > { %v1624_v25 = vadd.f32 %v1623_v24, %v1622_v21  ;;  %v1625_v26 = vpop.f32.mrb[6].mxu0  ;;  %1113 = vmatmul.mubr.bf16.vlgmr.msra.gmra.mrb[0].mxu1 %v929_v22  ;;  %v848_v24 = vpop.permute.xlu0 %847 }
 0x160   : > { %v1626_v27 = vpop.f32.mrb[7].mxu0  ;;  %1120 = vmatprep.mubr.bf16.mxu1 %v1586_v23 }
 0x161   : > { %v1627_v28 = vadd.f32 %v1626_v27, %v1625_v26  ;;  %v867_v30 = vmul.f32 %v1624_v25, %v798_v20  ;;  %v853_v25 = vpop.permute.xlu1 %852 }
 0x163   : > { %v868_v31 = vmul.f32 %v1627_v28, %v803_v29 }
 0x165   : > { %v1628_v32 = vpop.f32.mrb[8].mxu0  ;;  %v931_v33 = vpack.c.bf16 %v868_v31, %v867_v30  ;;  %v1592_v30 = vld [vmem:[%s2193_s18 + $0x38] sm:$0xff]   ;;  %s2415_s18 = sshll.u32 %s2187_s30, 6 }
 0x166   : > { %v1629_v35 = vpop.f32.mrb[9].mxu0  ;;  %s2304_s19 = scalar_lea.vmem [#allocation8], %s2415_s18 }
 0x167   : > { %v1630_v36 = vadd.f32 %v1629_v35, %v1628_v32  ;;  %v1631_v37 = vpop.f32.mrb[10].mxu0  ;;  %1121 = vmatmul.mubr.bf16.gmra.mrb[4].mxu1 %v931_v33  ;;  %s1287_s28 = sshll.u32 %s2304_s19, 4  ;;  %s2334_s28 = int_to_ptr.vmem [resolvable:$true] %s1287_s28 }
 0x168   : > { %v1632_v38 = vpop.f32.mrb[11].mxu0  ;;  %1128 = vmatprep.mubr.bf16.mxu1 %v1587_v34  ;;  %s1898_s9 = scalar_lea.vmem %s2334_s28, 1024  ;;  %p1905_p0 = scmp.lt.s32.totalorder %s2334_s28, %s1903_s15 }
 0x169   : > { %v1633_v39 = vadd.f32 %v1632_v38, %v1631_v37  ;;  %v869_v42 = vmul.f32 %v1630_v36, %v808_v40  ;;  %v858_v36 = vpop.permute.xlu0 %857  ;;  %v863_v37 = vpop.permute.xlu1 %862  ;;  %p1899_p8 = scmp.ne.s32.totalorder %s2334_s28, %s1898_s9  ;;  %p1906_p5 = scmp.lt.s32.totalorder %s1904_s29, %s1898_s9 }
 0x16b   : > { %v870_v43 = vmul.f32 %v1633_v39, %v813_v41  ;;  %p1900_p12 = pnand %p1899_p8, %p2128_p10  ;;  %p1907_p9 = por %p1906_p5, %p1905_p0 }
 0x16d   : > { %v1634_v44 = vpop.f32.mrb[12].mxu0  ;;  %v933_v45 = vpack.c.bf16 %v870_v43, %v869_v42  ;;  %v2298_v42 = vld [vmem:[%s2389_s5] ss:$0 sm:$0xff]  ;;  %p1901_p11 = pneg %p1900_p12 }
 0x16e   : > { %v1635_v47 = vpop.f32.mrb[13].mxu0 }
 0x16f   : > { %v1636_v48 = vadd.f32 %v1635_v47, %v1634_v44  ;;  %v1637_v49 = vpop.f32.mrb[14].mxu0  ;;  %1129 = vmatmul.mubr.bf16.gmra.mrb[8].mxu1 %v933_v45  ;;  %p1908_p1 = pnand %p1907_p9, %p1901_p11 }
 0x170   : > { %v1638_v50 = vpop.f32.mrb[15].mxu0  ;;  %1136 = vmatprep.mubr.bf16.mxu1 %v1588_v46 }
 0x171   : > { %v1639_v51 = vadd.f32 %v1638_v50, %v1637_v49  ;;  %v871_v54 = vmul.f32 %v1636_v48, %v818_v52 }
 0x173   : > { %v872_v55 = vmul.f32 %v1639_v51, %v823_v53 }
 0x175   : > { %v1640_v56 = vpop.f32.mrb[16].mxu0  ;;  %v935_v57 = vpack.c.bf16 %v872_v55, %v871_v54 }
 0x176   : > { %v1641_v59 = vpop.f32.mrb[17].mxu0 }
 0x177   : > { %v1642_v60 = vadd.f32 %v1641_v59, %v1640_v56  ;;  %v1643_v61 = vpop.f32.mrb[18].mxu0  ;;  %1137 = vmatmul.mubr.bf16.gmra.mrb[12].mxu1 %v935_v57 }
 0x178   : > { %v1644_v62 = vpop.f32.mrb[19].mxu0  ;;  %1144 = vmatprep.mubr.bf16.mxu1 %v1589_v58 }
 0x179   : > { %v1645_v63 = vadd.f32 %v1644_v62, %v1643_v61  ;;  %v873_v2 = vmul.f32 %v1642_v60, %v828_v0 }
 0x17b   : > { %v874_v3 = vmul.f32 %v1645_v63, %v833_v1 }
 0x17d   : > { %v1646_v4 = vpop.f32.mrb[20].mxu0  ;;  %v937_v5 = vpack.c.bf16 %v874_v3, %v873_v2 }
 0x17e   : > { %v1647_v7 = vpop.f32.mrb[21].mxu0 }
 0x17f   : > { %v1648_v8 = vadd.f32 %v1647_v7, %v1646_v4  ;;  %v1649_v9 = vpop.f32.mrb[22].mxu0  ;;  %1145 = vmatmul.mubr.bf16.gmra.mrb[16].mxu1 %v937_v5 }
 0x180   : > { %v1650_v10 = vpop.f32.mrb[23].mxu0  ;;  %1152 = vmatprep.mubr.bf16.mxu1 %v1590_v6 }
 0x181   : > { %v1651_v11 = vadd.f32 %v1650_v10, %v1649_v9  ;;  %v875_v14 = vmul.f32 %v1648_v8, %v838_v12 }
 0x183   : > { %v876_v15 = vmul.f32 %v1651_v11, %v843_v13 }
 0x185   : > { %v1652_v16 = vpop.f32.mrb[24].mxu0  ;;  %v939_v17 = vpack.c.bf16 %v876_v15, %v875_v14 }
 0x186   : > { %v1653_v19 = vpop.f32.mrb[25].mxu0 }
 0x187   : > { %v1654_v20 = vadd.f32 %v1653_v19, %v1652_v16  ;;  %v1655_v21 = vpop.f32.mrb[26].mxu0  ;;  %1153 = vmatmul.mubr.bf16.gmra.mrb[20].mxu1 %v939_v17 }
 0x188   : > { %v1656_v22 = vpop.f32.mrb[27].mxu0  ;;  %1160 = vmatprep.mubr.bf16.mxu1 %v1591_v18 }
 0x189   : > { %v1657_v23 = vadd.f32 %v1656_v22, %v1655_v21  ;;  %v877_v26 = vmul.f32 %v1654_v20, %v848_v24 }
 0x18b   : > { %v878_v27 = vmul.f32 %v1657_v23, %v853_v25 }
 0x18d   : > { %v1658_v28 = vpop.f32.mrb[28].mxu0  ;;  %v941_v29 = vpack.c.bf16 %v878_v27, %v877_v26 }
 0x18e   : > { %v1659_v31 = vpop.f32.mrb[29].mxu0 }
 0x18f   : > { %v1660_v32 = vadd.f32 %v1659_v31, %v1658_v28  ;;  %v1661_v33 = vpop.f32.mrb[30].mxu0  ;;  %1161 = vmatmul.mubr.bf16.gmra.mrb[24].mxu1 %v941_v29 }
 0x190   : > { %v1662_v34 = vpop.f32.mrb[31].mxu0  ;;  %1168 = vmatprep.mubr.bf16.mxu1 %v1592_v30 }
 0x191   : > { %v1663_v35 = vadd.f32 %v1662_v34, %v1661_v33  ;;  %v879_v38 = vmul.f32 %v1660_v32, %v858_v36 }
 0x193   : > { %v880_v39 = vmul.f32 %v1663_v35, %v863_v37 }
 0x195   : > { %v943_v40 = vpack.c.bf16 %v880_v39, %v879_v38 }
 0x197   : > { %1169 = vmatmul.mubr.bf16.gmra.mrb[28].mxu1 %v943_v40 }
 0x232   : > { %v1680_v41 = vpop.f32.mrb[0].mxu1 }
 0x233   : > { %v1681_v43 = vpop.f32.mrb[1].mxu1 }
 0x234   : > { %v1682_v44 = vadd.f32 %v1681_v43, %v1680_v41  ;;  %v1683_v45 = vpop.f32.mrb[2].mxu1 }
 0x235   : > { %v1684_v46 = vpop.f32.mrb[3].mxu1 }
 0x236   : > { %v1115_v47 = vadd.f32 %v1682_v44, %v2298_v42  ;;  %v1685_v48 = vadd.f32 %v1684_v46, %v1683_v45 }
 0x238   : > { %v1118_v49 = vadd.f32 %v1685_v48, %v2298_v42  ;;  %v1177_v50 = vmax.f32 %v1115_v47, 0.0 }
 0x23a   : > { %v1178_v51 = vmax.f32 %v1118_v49, 0.0  ;;  %v1686_v52 = vpop.f32.mrb[4].mxu1 }
 0x23b   : > { %v1687_v53 = vpop.f32.mrb[5].mxu1 }
 0x23c   : > { %v1549_v54 = vpack.c.bf16 %v1178_v51, %v1177_v50  ;;  %v1688_v55 = vadd.f32 %v1687_v53, %v1686_v52  ;;  %v1689_v56 = vpop.f32.mrb[6].mxu1 }
 0x23d   : > { %v1690_v57 = vpop.f32.mrb[7].mxu1 }
 0x23e   : > { %1550 = vst [vmem:[%s2304_s19] sm:$0xff] %v1549_v54   ;;  %v1123_v58 = vadd.f32 %v1688_v55, %v2298_v42  ;;  %v1691_v59 = vadd.f32 %v1690_v57, %v1689_v56 }
 0x240   : > { %v1126_v60 = vadd.f32 %v1691_v59, %v2298_v42  ;;  %v1179_v61 = vmax.f32 %v1123_v58, 0.0 }
 0x242   : > { %v1180_v62 = vmax.f32 %v1126_v60, 0.0  ;;  %v1692_v63 = vpop.f32.mrb[8].mxu1 }
 0x243   : > { %v1693_v0 = vpop.f32.mrb[9].mxu1 }
 0x244   : > { %v1554_v1 = vpack.c.bf16 %v1180_v62, %v1179_v61  ;;  %v1694_v2 = vadd.f32 %v1693_v0, %v1692_v63  ;;  %v1695_v3 = vpop.f32.mrb[10].mxu1 }
 0x245   : > { %v1696_v4 = vpop.f32.mrb[11].mxu1 }
 0x246   : > { %1593 = vst [vmem:[%s2304_s19 + $0x8] sm:$0xff] %v1554_v1   ;;  %v1131_v5 = vadd.f32 %v1694_v2, %v2298_v42  ;;  %v1697_v6 = vadd.f32 %v1696_v4, %v1695_v3 }
 0x248   : > { %v1134_v7 = vadd.f32 %v1697_v6, %v2298_v42  ;;  %v1181_v8 = vmax.f32 %v1131_v5, 0.0 }
 0x24a   : > { %v1182_v9 = vmax.f32 %v1134_v7, 0.0  ;;  %v1698_v10 = vpop.f32.mrb[12].mxu1 }
 0x24b   : > { %v1699_v11 = vpop.f32.mrb[13].mxu1 }
 0x24c   : > { %v1559_v12 = vpack.c.bf16 %v1182_v9, %v1181_v8  ;;  %v1700_v13 = vadd.f32 %v1699_v11, %v1698_v10  ;;  %v1701_v14 = vpop.f32.mrb[14].mxu1 }
 0x24d   : > { %v1702_v15 = vpop.f32.mrb[15].mxu1 }
 0x24e   : > { %1594 = vst [vmem:[%s2304_s19 + $0x10] sm:$0xff] %v1559_v12   ;;  %v1139_v16 = vadd.f32 %v1700_v13, %v2298_v42  ;;  %v1703_v17 = vadd.f32 %v1702_v15, %v1701_v14 }
 0x250   : > { %v1142_v18 = vadd.f32 %v1703_v17, %v2298_v42  ;;  %v1183_v19 = vmax.f32 %v1139_v16, 0.0 }
 0x252   : > { %v1184_v20 = vmax.f32 %v1142_v18, 0.0  ;;  %v1704_v21 = vpop.f32.mrb[16].mxu1 }
 0x253   : > { %v1705_v22 = vpop.f32.mrb[17].mxu1 }
 0x254   : > { %v1564_v23 = vpack.c.bf16 %v1184_v20, %v1183_v19  ;;  %v1706_v24 = vadd.f32 %v1705_v22, %v1704_v21  ;;  %v1707_v25 = vpop.f32.mrb[18].mxu1 }
 0x255   : > { %v1708_v26 = vpop.f32.mrb[19].mxu1 }
 0x256   : > { %1595 = vst [vmem:[%s2304_s19 + $0x18] sm:$0xff] %v1564_v23   ;;  %v1147_v27 = vadd.f32 %v1706_v24, %v2298_v42  ;;  %v1709_v28 = vadd.f32 %v1708_v26, %v1707_v25 }
 0x258   : > { %v1150_v29 = vadd.f32 %v1709_v28, %v2298_v42  ;;  %v1185_v30 = vmax.f32 %v1147_v27, 0.0 }
 0x25a   : > { %v1186_v31 = vmax.f32 %v1150_v29, 0.0  ;;  %v1710_v32 = vpop.f32.mrb[20].mxu1 }
 0x25b   : > { %v1711_v33 = vpop.f32.mrb[21].mxu1 }
 0x25c   : > { %v1569_v34 = vpack.c.bf16 %v1186_v31, %v1185_v30  ;;  %v1712_v35 = vadd.f32 %v1711_v33, %v1710_v32  ;;  %v1713_v36 = vpop.f32.mrb[22].mxu1 }
 0x25d   : > { %v1714_v37 = vpop.f32.mrb[23].mxu1 }
 0x25e   : > { %1596 = vst [vmem:[%s2304_s19 + $0x20] sm:$0xff] %v1569_v34   ;;  %v1155_v38 = vadd.f32 %v1712_v35, %v2298_v42  ;;  %v1715_v39 = vadd.f32 %v1714_v37, %v1713_v36 }
 0x260   : > { %v1158_v40 = vadd.f32 %v1715_v39, %v2298_v42  ;;  %v1187_v41 = vmax.f32 %v1155_v38, 0.0 }
 0x262   : > { %v1188_v43 = vmax.f32 %v1158_v40, 0.0  ;;  %v1716_v44 = vpop.f32.mrb[24].mxu1 }
 0x263   : > { %v1717_v45 = vpop.f32.mrb[25].mxu1 }
 0x264   : > { %v1574_v46 = vpack.c.bf16 %v1188_v43, %v1187_v41  ;;  %v1718_v47 = vadd.f32 %v1717_v45, %v1716_v44  ;;  %v1719_v48 = vpop.f32.mrb[26].mxu1 }
 0x265   : > { %v1720_v49 = vpop.f32.mrb[27].mxu1 }
 0x266   : > { %1597 = vst [vmem:[%s2304_s19 + $0x28] sm:$0xff] %v1574_v46   ;;  %v1163_v50 = vadd.f32 %v1718_v47, %v2298_v42  ;;  %v1721_v51 = vadd.f32 %v1720_v49, %v1719_v48 }
 0x268   : > { %v1166_v52 = vadd.f32 %v1721_v51, %v2298_v42  ;;  %v1189_v53 = vmax.f32 %v1163_v50, 0.0 }
 0x26a   : > { %v1190_v54 = vmax.f32 %v1166_v52, 0.0  ;;  %v1722_v55 = vpop.f32.mrb[28].mxu1 }
 0x26b   : > { %v1723_v56 = vpop.f32.mrb[29].mxu1 }
 0x26c   : > { %v1579_v57 = vpack.c.bf16 %v1190_v54, %v1189_v53  ;;  %v1724_v58 = vadd.f32 %v1723_v56, %v1722_v55  ;;  %v1725_v59 = vpop.f32.mrb[30].mxu1 }
 0x26d   : > { %v1726_v60 = vpop.f32.mrb[31].mxu1 }
 0x26e   : > { %1598 = vst [vmem:[%s2304_s19 + $0x30] sm:$0xff] %v1579_v57   ;;  %v1171_v61 = vadd.f32 %v1724_v58, %v2298_v42  ;;  %v1727_v62 = vadd.f32 %v1726_v60, %v1725_v59 }
 0x270   : > { %v1174_v63 = vadd.f32 %v1727_v62, %v2298_v42  ;;  %v1191_v0 = vmax.f32 %v1171_v61, 0.0 }
 0x272   : > { %v1192_v1 = vmax.f32 %v1174_v63, 0.0 }
 0x274   : > { %v1584_v2 = vpack.c.bf16 %v1192_v1, %v1191_v0 }
 0x276   : > { %1599 = vst [vmem:[%s2304_s19 + $0x38] sm:$0xff] %v1584_v2  }
 0x277   : > { %1911 = shalt.err (!%p1908_p1)
}
 0x278   : > { %s1912_s7 = scalar_lea.hbm %s2332_s16, 1024  ;;  %s1916_s18 = scalar_lea.hbm %s2390_s6, 2048 }
 0x279   : > { %p1913_p2 = scmp.ne.s32.totalorder %s2332_s16, %s1912_s7  ;;  %p1917_p13 = scmp.lt.u32.totalorder %s2332_s16, %s2390_s6 }
 0x27a   : > { %p1918_p4 = scmp.lt.u32.totalorder %s1916_s18, %s1912_s7  ;;  %p1920_p8 = scmp.lt.u32.totalorder %s1912_s7, %s2332_s16 }
 0x27b   : > { %p1914_p3 = pnand %p1913_p2, %p2128_p10 }
 0x27c   : > { %p1919_p6 = por %p1918_p4, %p1917_p13 }
 0x27d   : > { %p1915_p7 = pneg %p1914_p3 }
 0x27e   : > { %p1921_p12 = por %p1920_p8, %p1919_p6 }
 0x280   : > { %p1922_p11 = pnand %p1921_p12, %p1915_p7 }
 0x282   : > { %1925 = shalt.err (!%p1922_p11)
}
 0x283   : > { %s1992_s11 = smov 64   ;;  %s1993_s10 = smov 4  }
 0x284   : > { %1734 = dma.vmem_to_hbm [thread:$0]  (%p2128_p10), %s2334_s28, 1024, %s2332_s16, %s1274_s27, %s1992_s11, %s1992_s11, %s1993_s10  }
 0x285 PF: > { %s1302_s9 = sand.u32 1, %s1964_s21   ;;  %p2416_p0 = scmp.ne.s32.totalorder %s2402_s8, 0 }
 0x286   : > { %p2417_p5 = scmp.ge.s32.totalorder %s1984_s26, 2  ;;  %s1303_s24 = scalar_lea.sflag [#allocation5], %s1302_s9 }
 0x288   : > { %p1745_p9 = pnand %p2417_p5, %p2416_p0 }
 0x28a   : > { %1959 = dma.done.wait (!%p1745_p9), %s1303_s24, 1024  }
 0x28b   : > { %1961 = vsyncadd (!%p1745_p9), %s1303_s24, 4294966272  ;;  %s23_s26 = sadd.s32 1, %s1984_s26   ;;  %s2418_s21 = smov %s1968_s22 }
 0x28c   : > { %p20_p1 = scmp.ge.s32.totalorder %s23_s26, 4   ;;  %s2419_s22 = smov %s1972_s23 }
 0x28d   : > { %s2420_s23 = smov %s2137_s20  ;;  %s2421_s24 = smov %s1980_s25 }
 0x28e   : > { %s2422_s25 = smov %s2424_s13  ;;  %22 = sbr.rel (!%p20_p1) target bundleno = 9 (0x9), region = 110 }
 0x295   :  { %1308 = vsyncpa [#allocation4], 1 }
 0x296   :  { %1310 = vsyncpa [#allocation4 + $0x1], 1 }
 0x297   :  { %1311 = vsyncpa [#allocation7], 1 }
 0x298   :  { %1312 = vsyncpa [#allocation5], 1 }
 0x299   :  { %1314 = vsyncpa [#allocation5 + $0x1], 1 }

</bundles_post_ra>
